<compile_context>
chip_gen: v5e
topology: v5e:2x2
jax: 0.10.0
libtpu: 0.0.40
codegen_flags: <defaults>
</compile_context>

<pallas_src>
import functools

import jax
import jax.numpy as jnp
from jax.experimental import pallas as pl
from jax.experimental.pallas import tpu as pltpu


def _round_up(n: int, m: int) -> int:
    return (n + m - 1) // m * m


# ---------------------------------------------------------------------------
# Fused MLP kernel: h = x; for each linear layer h = h @ W + b (+ ReLU on hidden).
# All refs live in VMEM. Layers are statically unrolled (fixed layer list), so the
# activation is carried as a traced value — Mosaic keeps it in vregs / VMEM scratch
# and schedules every layer's matmul under the MXU without HBM traffic.
# ---------------------------------------------------------------------------
def _mlp_kernel(x_ref, *refs, num_linear: int):
    o_ref = refs[-1]
    h = x_ref[...]
    for i in range(num_linear):
        w = refs[2 * i][...]          # (in_pad, out_pad), lane-aligned f32
        b = refs[2 * i + 1][...]      # (1, out_pad)
        h = jnp.dot(h, w, preferred_element_type=jnp.float32) + b
        if i < num_linear - 1:
            h = jnp.maximum(h, 0.0)   # ReLU on hidden layers only
    o_ref[...] = h.astype(o_ref.dtype)


# ---------------------------------------------------------------------------
# Parameter handling
# ---------------------------------------------------------------------------
def init_params(key, input_dim, output_dim, hidden_layer_size, num_layers):
    """PyTorch-layout params (W: (out, in), b: (out,)), nn.Linear-style uniform init."""
    params = []
    current = input_dim
    dims = [hidden_layer_size] * num_layers + [output_dim]
    for out_dim in dims:
        key, kw, kb = jax.random.split(key, 3)
        bound = 1.0 / jnp.sqrt(jnp.float32(current))
        w = jax.random.uniform(kw, (out_dim, current), jnp.float32, -bound, bound)
        b = jax.random.uniform(kb, (out_dim,), jnp.float32, -bound, bound)
        params.append((w, b))
        current = out_dim
    return params


def pack_params(params):
    """One-time prep outside the hot path: transpose to (in, out) and zero-pad both
    feature dims to multiples of 128 so every matmul/store is lane-dense."""
    packed = []
    for w, b in params:
        out_dim, in_dim = w.shape
        in_pad = _round_up(in_dim, 128)
        out_pad = _round_up(out_dim, 128)
        w_t = jnp.zeros((in_pad, out_pad), jnp.float32).at[:in_dim, :out_dim].set(w.T)
        b_p = jnp.zeros((1, out_pad), jnp.float32).at[0, :out_dim].set(b)
        packed.append((w_t, b_p))
    return packed


# ---------------------------------------------------------------------------
# Wrapper: pads x, builds the batch grid, calls the fused kernel, slices result.
# ---------------------------------------------------------------------------
def fully_connected_nn_forward(x, packed_params, output_dim, *, tile_b=None):
    B, in_dim = x.shape
    in_pad = packed_params[0][0].shape[0]
    out_pad = packed_params[-1][0].shape[1]
    num_linear = len(packed_params)

    # Resident parameter bytes (held in VMEM across all grid steps).
    param_bytes = sum(w.size * 4 + b.size * 4 for w, b in packed_params)
    max_width = max([in_pad] + [w.shape[1] for w, _ in packed_params])

    if tile_b is None:
        # Largest sublane-aligned batch tile whose double-buffered in/out tiles,
        # resident params (conservatively counted twice), and activation scratch
        # fit under ~12 MiB — safe on every generation's default scoped VMEM.
        budget = 12 * 1024 * 1024

        def footprint(tb):
            io = 2 * tb * (in_pad + out_pad) * 4   # double-buffered in/out tiles
            act = 2 * tb * max_width * 4           # live activation + spill headroom
            return io + act + 2 * param_bytes

        tile_b = 1024
        while tile_b > 8 and footprint(tile_b) > budget:
            tile_b //= 2
        tile_b = max(8, min(tile_b, _round_up(B, 8)))
    b_pad = _round_up(B, tile_b)

    x_p = jnp.zeros((b_pad, in_pad), jnp.float32).at[:B, :in_dim].set(x)

    flat_params = []
    in_specs = [pl.BlockSpec((tile_b, in_pad), lambda i: (i, 0))]
    for w, b in packed_params:
        flat_params.extend((w, b))
        # Full-array blocks with constant index_map -> weights stay resident in VMEM
        # (no re-fetch between consecutive grid steps).
        in_specs.append(pl.BlockSpec(w.shape, lambda i: (0, 0)))
        in_specs.append(pl.BlockSpec(b.shape, lambda i: (0, 0)))

    kernel = functools.partial(_mlp_kernel, num_linear=num_linear)
    out_padded = pl.pallas_call(
        kernel,
        out_shape=jax.ShapeDtypeStruct((b_pad, out_pad), jnp.float32),
        grid=(b_pad // tile_b,),
        in_specs=in_specs,
        out_specs=pl.BlockSpec((tile_b, out_pad), lambda i: (i, 0)),
        compiler_params=pltpu.CompilerParams(
            dimension_semantics=("parallel",),
        ),
    )(x_p, *flat_params)

    return out_padded[:B, :output_dim]


# ---------------------------------------------------------------------------
# Pure-JAX reference (uses original PyTorch-layout params)
# ---------------------------------------------------------------------------
def reference_forward(x, params):
    h = x
    n = len(params)
    for i, (w, b) in enumerate(params):
        h = h @ w.T + b
        if i < n - 1:
            h = jnp.maximum(h, 0.0)
    return h


if __name__ == "__main__":
    # Small shapes consistent with the module: flattened input features,
    # hidden_layer_size=256 as in the spec, num_layers=4, small multivariate output.
    batch = 16
    input_dim = 48            # e.g. X_train of shape (batch, 3, 16) flattened
    hidden_layer_size = 256   # matches the PyTorch spec
    num_layers = 4
    output_dim = 4

    key = jax.random.PRNGKey(0)
    key, kx = jax.random.split(key)
    x = jax.random.normal(kx, (batch, input_dim), jnp.float32)

    params = init_params(key, input_dim, output_dim, hidden_layer_size, num_layers)
    packed = pack_params(params)   # one-time: transpose + pad (not in the hot path)

    out = fully_connected_nn_forward(x, packed, output_dim)
    out = jax.block_until_ready(out)

    ref = reference_forward(x, params)
    assert out.shape == (batch, output_dim), out.shape
    assert jnp.allclose(out, ref, atol=1e-5, rtol=1e-5), "mismatch vs reference"

    print("KERNEL_OK")
</pallas_src>

<mosaic_0001>
module attributes {stable_mosaic.version = 11 : i64} {
  func.func @_mlp_kernel(%arg0: i32, %arg1: memref<16x128xf32, #tpu.memory_space<vmem>>, %arg2: memref<128x256xf32, #tpu.memory_space<vmem>>, %arg3: memref<1x256xf32, #tpu.memory_space<vmem>>, %arg4: memref<256x256xf32, #tpu.memory_space<vmem>>, %arg5: memref<1x256xf32, #tpu.memory_space<vmem>>, %arg6: memref<256x256xf32, #tpu.memory_space<vmem>>, %arg7: memref<1x256xf32, #tpu.memory_space<vmem>>, %arg8: memref<256x256xf32, #tpu.memory_space<vmem>>, %arg9: memref<1x256xf32, #tpu.memory_space<vmem>>, %arg10: memref<256x128xf32, #tpu.memory_space<vmem>>, %arg11: memref<1x128xf32, #tpu.memory_space<vmem>>, %arg12: memref<16x128xf32, #tpu.memory_space<vmem>>) attributes {dimension_semantics = [#tpu.dimension_semantics<parallel>], iteration_bounds = array<i64: 1>, scalar_prefetch = 0 : i64, scratch_operands = 0 : i64, tpu.core_type = #tpu.core_type<tc>, window_params = [{transform_indices = @transform_0, window_bounds = array<i64: 16, 128>}, {pipeline_mode = #tpu.pipeline_mode<synchronous>, transform_indices = @transform_1, window_bounds = array<i64: 128, 256>}, {pipeline_mode = #tpu.pipeline_mode<synchronous>, transform_indices = @transform_2, window_bounds = array<i64: 1, 256>}, {pipeline_mode = #tpu.pipeline_mode<synchronous>, transform_indices = @transform_3, window_bounds = array<i64: 256, 256>}, {pipeline_mode = #tpu.pipeline_mode<synchronous>, transform_indices = @transform_4, window_bounds = array<i64: 1, 256>}, {pipeline_mode = #tpu.pipeline_mode<synchronous>, transform_indices = @transform_5, window_bounds = array<i64: 256, 256>}, {pipeline_mode = #tpu.pipeline_mode<synchronous>, transform_indices = @transform_6, window_bounds = array<i64: 1, 256>}, {pipeline_mode = #tpu.pipeline_mode<synchronous>, transform_indices = @transform_7, window_bounds = array<i64: 256, 256>}, {pipeline_mode = #tpu.pipeline_mode<synchronous>, transform_indices = @transform_8, window_bounds = array<i64: 1, 256>}, {pipeline_mode = #tpu.pipeline_mode<synchronous>, transform_indices = @transform_9, window_bounds = array<i64: 256, 128>}, {pipeline_mode = #tpu.pipeline_mode<synchronous>, transform_indices = @transform_10, window_bounds = array<i64: 1, 128>}, {transform_indices = @transform_11, window_bounds = array<i64: 16, 128>}]} {
    %c0 = arith.constant 0 : index
    %c0_0 = arith.constant 0 : index
    %0 = vector.load %arg1[%c0, %c0_0] : memref<16x128xf32, #tpu.memory_space<vmem>>, vector<16x128xf32>
    %c0_1 = arith.constant 0 : index
    %c0_2 = arith.constant 0 : index
    %1 = vector.load %arg2[%c0_1, %c0_2] : memref<128x256xf32, #tpu.memory_space<vmem>>, vector<128x256xf32>
    %c0_3 = arith.constant 0 : index
    %c0_4 = arith.constant 0 : index
    %2 = vector.load %arg3[%c0_3, %c0_4] : memref<1x256xf32, #tpu.memory_space<vmem>>, vector<1x256xf32>
    %cst = arith.constant dense<0.000000e+00> : vector<16x256xf32>
    %3 = tpu.matmul %0, %1, %cst {dimension_numbers = #tpu.dot_dimension_numbers<[1], [0], [0], [1], [0, 0, 1, 1], [], []>} : vector<16x128xf32>, vector<128x256xf32>, vector<16x256xf32> -> vector<16x256xf32>
    %4 = vector.broadcast %2 : vector<1x256xf32> to vector<16x256xf32>
    %5 = arith.addf %3, %4 : vector<16x256xf32>
    %cst_5 = arith.constant 0.000000e+00 : f32
    %6 = vector.broadcast %cst_5 : f32 to vector<16x256xf32>
    %7 = arith.maximumf %5, %6 : vector<16x256xf32>
    %c0_6 = arith.constant 0 : index
    %c0_7 = arith.constant 0 : index
    %8 = vector.load %arg4[%c0_6, %c0_7] : memref<256x256xf32, #tpu.memory_space<vmem>>, vector<256x256xf32>
    %c0_8 = arith.constant 0 : index
    %c0_9 = arith.constant 0 : index
    %9 = vector.load %arg5[%c0_8, %c0_9] : memref<1x256xf32, #tpu.memory_space<vmem>>, vector<1x256xf32>
    %cst_10 = arith.constant dense<0.000000e+00> : vector<16x256xf32>
    %10 = tpu.matmul %7, %8, %cst_10 {dimension_numbers = #tpu.dot_dimension_numbers<[1], [0], [0], [1], [0, 0, 1, 1], [], []>} : vector<16x256xf32>, vector<256x256xf32>, vector<16x256xf32> -> vector<16x256xf32>
    %11 = vector.broadcast %9 : vector<1x256xf32> to vector<16x256xf32>
    %12 = arith.addf %10, %11 : vector<16x256xf32>
    %cst_11 = arith.constant 0.000000e+00 : f32
    %13 = vector.broadcast %cst_11 : f32 to vector<16x256xf32>
    %14 = arith.maximumf %12, %13 : vector<16x256xf32>
    %c0_12 = arith.constant 0 : index
    %c0_13 = arith.constant 0 : index
    %15 = vector.load %arg6[%c0_12, %c0_13] : memref<256x256xf32, #tpu.memory_space<vmem>>, vector<256x256xf32>
    %c0_14 = arith.constant 0 : index
    %c0_15 = arith.constant 0 : index
    %16 = vector.load %arg7[%c0_14, %c0_15] : memref<1x256xf32, #tpu.memory_space<vmem>>, vector<1x256xf32>
    %cst_16 = arith.constant dense<0.000000e+00> : vector<16x256xf32>
    %17 = tpu.matmul %14, %15, %cst_16 {dimension_numbers = #tpu.dot_dimension_numbers<[1], [0], [0], [1], [0, 0, 1, 1], [], []>} : vector<16x256xf32>, vector<256x256xf32>, vector<16x256xf32> -> vector<16x256xf32>
    %18 = vector.broadcast %16 : vector<1x256xf32> to vector<16x256xf32>
    %19 = arith.addf %17, %18 : vector<16x256xf32>
    %cst_17 = arith.constant 0.000000e+00 : f32
    %20 = vector.broadcast %cst_17 : f32 to vector<16x256xf32>
    %21 = arith.maximumf %19, %20 : vector<16x256xf32>
    %c0_18 = arith.constant 0 : index
    %c0_19 = arith.constant 0 : index
    %22 = vector.load %arg8[%c0_18, %c0_19] : memref<256x256xf32, #tpu.memory_space<vmem>>, vector<256x256xf32>
    %c0_20 = arith.constant 0 : index
    %c0_21 = arith.constant 0 : index
    %23 = vector.load %arg9[%c0_20, %c0_21] : memref<1x256xf32, #tpu.memory_space<vmem>>, vector<1x256xf32>
    %cst_22 = arith.constant dense<0.000000e+00> : vector<16x256xf32>
    %24 = tpu.matmul %21, %22, %cst_22 {dimension_numbers = #tpu.dot_dimension_numbers<[1], [0], [0], [1], [0, 0, 1, 1], [], []>} : vector<16x256xf32>, vector<256x256xf32>, vector<16x256xf32> -> vector<16x256xf32>
    %25 = vector.broadcast %23 : vector<1x256xf32> to vector<16x256xf32>
    %26 = arith.addf %24, %25 : vector<16x256xf32>
    %cst_23 = arith.constant 0.000000e+00 : f32
    %27 = vector.broadcast %cst_23 : f32 to vector<16x256xf32>
    %28 = arith.maximumf %26, %27 : vector<16x256xf32>
    %c0_24 = arith.constant 0 : index
    %c0_25 = arith.constant 0 : index
    %29 = vector.load %arg10[%c0_24, %c0_25] : memref<256x128xf32, #tpu.memory_space<vmem>>, vector<256x128xf32>
    %c0_26 = arith.constant 0 : index
    %c0_27 = arith.constant 0 : index
    %30 = vector.load %arg11[%c0_26, %c0_27] : memref<1x128xf32, #tpu.memory_space<vmem>>, vector<1x128xf32>
    %cst_28 = arith.constant dense<0.000000e+00> : vector<16x128xf32>
    %31 = tpu.matmul %28, %29, %cst_28 {dimension_numbers = #tpu.dot_dimension_numbers<[1], [0], [0], [1], [0, 0, 1, 1], [], []>} : vector<16x256xf32>, vector<256x128xf32>, vector<16x128xf32> -> vector<16x128xf32>
    %32 = vector.broadcast %30 : vector<1x128xf32> to vector<16x128xf32>
    %33 = arith.addf %31, %32 : vector<16x128xf32>
    %c0_29 = arith.constant 0 : index
    %c0_30 = arith.constant 0 : index
    %34 = vector.load %arg12[%c0_29, %c0_30] : memref<16x128xf32, #tpu.memory_space<vmem>>, vector<16x128xf32>
    tpu.vector_store %arg12[%c0_29, %c0_30], %33 {strides = array<i32>} : memref<16x128xf32, #tpu.memory_space<vmem>>, vector<16x128xf32>,
    return
  }
  func.func @transform_0(%arg0: i32) -> (i32, i32) {
    %c0_i32 = arith.constant 0 : i32
    %c0_i32_0 = arith.constant 0 : i32
    return %arg0, %c0_i32 : i32, i32
  }
  func.func @transform_1(%arg0: i32) -> (i32, i32) {
    %c0_i32 = arith.constant 0 : i32
    %c0_i32_0 = arith.constant 0 : i32
    %c0_i32_1 = arith.constant 0 : i32
    return %c0_i32, %c0_i32_0 : i32, i32
  }
  func.func @transform_2(%arg0: i32) -> (i32, i32) {
    %c0_i32 = arith.constant 0 : i32
    %c0_i32_0 = arith.constant 0 : i32
    %c0_i32_1 = arith.constant 0 : i32
    return %c0_i32, %c0_i32_0 : i32, i32
  }
  func.func @transform_3(%arg0: i32) -> (i32, i32) {
    %c0_i32 = arith.constant 0 : i32
    %c0_i32_0 = arith.constant 0 : i32
    %c0_i32_1 = arith.constant 0 : i32
    return %c0_i32, %c0_i32_0 : i32, i32
  }
  func.func @transform_4(%arg0: i32) -> (i32, i32) {
    %c0_i32 = arith.constant 0 : i32
    %c0_i32_0 = arith.constant 0 : i32
    %c0_i32_1 = arith.constant 0 : i32
    return %c0_i32, %c0_i32_0 : i32, i32
  }
  func.func @transform_5(%arg0: i32) -> (i32, i32) {
    %c0_i32 = arith.constant 0 : i32
    %c0_i32_0 = arith.constant 0 : i32
    %c0_i32_1 = arith.constant 0 : i32
    return %c0_i32, %c0_i32_0 : i32, i32
  }
  func.func @transform_6(%arg0: i32) -> (i32, i32) {
    %c0_i32 = arith.constant 0 : i32
    %c0_i32_0 = arith.constant 0 : i32
    %c0_i32_1 = arith.constant 0 : i32
    return %c0_i32, %c0_i32_0 : i32, i32
  }
  func.func @transform_7(%arg0: i32) -> (i32, i32) {
    %c0_i32 = arith.constant 0 : i32
    %c0_i32_0 = arith.constant 0 : i32
    %c0_i32_1 = arith.constant 0 : i32
    return %c0_i32, %c0_i32_0 : i32, i32
  }
  func.func @transform_8(%arg0: i32) -> (i32, i32) {
    %c0_i32 = arith.constant 0 : i32
    %c0_i32_0 = arith.constant 0 : i32
    %c0_i32_1 = arith.constant 0 : i32
    return %c0_i32, %c0_i32_0 : i32, i32
  }
  func.func @transform_9(%arg0: i32) -> (i32, i32) {
    %c0_i32 = arith.constant 0 : i32
    %c0_i32_0 = arith.constant 0 : i32
    %c0_i32_1 = arith.constant 0 : i32
    return %c0_i32, %c0_i32_0 : i32, i32
  }
  func.func @transform_10(%arg0: i32) -> (i32, i32) {
    %c0_i32 = arith.constant 0 : i32
    %c0_i32_0 = arith.constant 0 : i32
    %c0_i32_1 = arith.constant 0 : i32
    return %c0_i32, %c0_i32_0 : i32, i32
  }
  func.func @transform_11(%arg0: i32) -> (i32, i32) {
    %c0_i32 = arith.constant 0 : i32
    %c0_i32_0 = arith.constant 0 : i32
    return %arg0, %c0_i32 : i32, i32
  }
}

</mosaic_0001>

<bundles_post_ra>
// kernel: tpu_custom_call.1
= control target key start
LH: loop header
LB: loop body
LE: loop exit
PB: predicated region body
PF: predicated region fallthrough
CT: control target
= control target key end

     0   :  { %16 = vsyncpa [#allocation3], 0  ;;  %s1188_s0 = inlined_call_operand.hbm [shape: f32[16,128], index: 0, kind: input, shape index: {}]   ;;  %s1189_s1 = inlined_call_operand.hbm [shape: f32[128,256], index: 1, kind: input, shape index: {}]   ;;  %s1190_s2 = inlined_call_operand.hbm [shape: f32[1,256], index: 2, kind: input, shape index: {}]   ;;  %s1191_s3 = inlined_call_operand.hbm [shape: f32[256,256], index: 3, kind: input, shape index: {}]   ;;  %s1192_s4 = inlined_call_operand.vmem [shape: f32[1,256], index: 4, kind: input, shape index: {}]   ;;  %s1193_s5 = inlined_call_operand.hbm [shape: f32[256,256], index: 5, kind: input, shape index: {}]   ;;  %s1194_s6 = inlined_call_operand.vmem [shape: f32[1,256], index: 6, kind: input, shape index: {}]   ;;  %s1195_s7 = inlined_call_operand.hbm [shape: f32[256,256], index: 7, kind: input, shape index: {}]   ;;  %s1196_s8 = inlined_call_operand.vmem [shape: f32[1,256], index: 8, kind: input, shape index: {}]   ;;  %s1197_s9 = inlined_call_operand.hbm [shape: f32[256,128], index: 9, kind: input, shape index: {}]   ;;  %s1198_s10 = inlined_call_operand.vmem [shape: f32[1,128], index: 10, kind: input, shape index: {}]   ;;  %s1199_s11 = inlined_call_operand.hbm [shape: f32[16,128], index: 11, kind: output, shape index: {}]  }
   0x1   :  { %17 = vsyncpa [#allocation6], 0 }
   0x2   :  { %18 = vsyncpa [#allocation9], 0 }
   0x3   :  { %19 = vsyncpa [#allocation12], 0  ;;  %s38_s19 = sshll.u32 %s1189_s1, 4  ;;  %s39_s19 = int_to_ptr.hbm [resolvable:$true] %s38_s19 }
   0x4   :  { %20 = vsyncpa [#allocation4], 0  ;;  %s1055_s20 = smov [#allocation5]   ;;  %s62_s24 = sshll.u32 %s1191_s3, 4  ;;  %s63_s24 = int_to_ptr.hbm [resolvable:$true] %s62_s24 }
   0x5   :  { %s40_s21 = sshll.u32 %s1055_s20, 4  ;;  %s1056_s25 = smov 256   ;;  %s41_s21 = int_to_ptr.vmem [resolvable:$true] %s40_s21 }
   0x6   :  { %s1057_s26 = smov 16   ;;  %s1058_s27 = smov [#allocation8]  }
   0x7   :  { %46 = dma.hbm_to_vmem [thread:$0]  %s39_s19, 4096, %s41_s21, [#allocation6], %s1056_s25, %s1056_s25, %s1057_s26  }
   0x8   :  { %s64_s28 = sshll.u32 %s1058_s27, 4  ;;  %s92_s30 = sshll.u32 %s1195_s7, 4  ;;  %s65_s28 = int_to_ptr.vmem [resolvable:$true] %s64_s28  ;;  %s93_s30 = int_to_ptr.hbm [resolvable:$true] %s92_s30 }
   0x9   :  { %70 = dma.hbm_to_vmem [thread:$0]  %s63_s24, 8192, %s65_s28, [#allocation9], %s1056_s25, %s1056_s25, %s1057_s26  }
   0xa   :  { %s25_s13 = sshll.u32 %s1188_s0, 4  ;;  %s1059_s14 = smov [#allocation11]   ;;  %s26_s13 = int_to_ptr.hbm [resolvable:$true] %s25_s13 }
   0xb   :  { %s94_s15 = sshll.u32 %s1059_s14, 4  ;;  %s1060_s16 = smov [#allocation2]   ;;  %s95_s15 = int_to_ptr.vmem [resolvable:$true] %s94_s15 }
   0xc   :  { %100 = dma.hbm_to_vmem [thread:$0]  %s93_s30, 8192, %s95_s15, [#allocation12], %s1056_s25, %s1056_s25, %s1057_s26  }
   0xd   :  { %s27_s7 = sshll.u32 %s1060_s16, 4  ;;  %s1061_s17 = smov 128   ;;  %s28_s7 = int_to_ptr.vmem [resolvable:$true] %s27_s7 }
   0xe   :  { %s1062_s18 = smov 8   ;;  %s52_s0 = sshll.u32 %s1190_s2, 4  ;;  %s53_s0 = int_to_ptr.hbm [resolvable:$true] %s52_s0 }
   0xf   :  { %33 = dma.hbm_to_vmem [thread:$0]  %s26_s13, 256, %s28_s7, [#allocation3], %s1061_s17, %s1061_s17, %s1062_s18  }
  0x10   :  { %s1063_s21 = smov [#allocation7]   ;;  %s77_s27 = sshll.u32 %s1193_s5, 4  ;;  %s78_s27 = int_to_ptr.hbm [resolvable:$true] %s77_s27 }
  0x11   :  { %s54_s22 = sshll.u32 %s1063_s21, 4  ;;  %s1064_s28 = smov [#allocation10]   ;;  %s55_s22 = int_to_ptr.vmem [resolvable:$true] %s54_s22 }
  0x12   :  { %57 = dma.hbm_to_vmem [thread:$0]  %s53_s0, 32, %s55_s22, [#allocation6]  }
  0x13   :  { %s79_s29 = sshll.u32 %s1064_s28, 4  ;;  %s107_s3 = sshll.u32 %s1197_s9, 4  ;;  %s80_s29 = int_to_ptr.vmem [resolvable:$true] %s79_s29  ;;  %s108_s3 = int_to_ptr.hbm [resolvable:$true] %s107_s3 }
  0x14   :  { %85 = dma.hbm_to_vmem [thread:$0]  %s78_s27, 8192, %s80_s29, [#allocation9], %s1056_s25, %s1056_s25, %s1057_s26  }
  0x15   :  { %s1065_s2 = smov [#allocation13]  }
  0x16   :  { %s109_s12 = sshll.u32 %s1065_s2, 4  ;;  %s110_s12 = int_to_ptr.vmem [resolvable:$true] %s109_s12 }
  0x17   :  { %115 = dma.hbm_to_vmem [thread:$0]  %s108_s3, 4096, %s110_s12, [#allocation12], %s1061_s17, %s1061_s17, %s1062_s18  }
  0x18   :  { %1045 = dma.done.wait [#allocation3], 256  }
  0x19   :  { %1046 = vsyncadd [#allocation3], 4294967040 }
  0x1a   :  { %1047 = dma.done.wait [#allocation6], 4128  }
  0x1b   :  { %1048 = vsyncadd [#allocation6], 4294963168 }
  0x1c   :  { %1049 = dma.done.wait [#allocation9], 16384  }
  0x1d   :  { %1050 = vsyncadd [#allocation9], 4294950912 }
  0x1e   :  { %1051 = dma.done.wait [#allocation12], 12288  }
  0x1f   :  { %1052 = vsyncadd [#allocation12], 4294955008  ;;  %v178_v0 = vld [vmem:[#allocation5 + $0xf0] sm:$0xff]  ;;  %v176_v1 = vld [vmem:[#allocation5 + $0xe0] sm:$0xff]  ;;  %s1066_s14 = smov [#allocation14]   ;;  %s824_s19 = sshll.u32 %s1199_s11, 4  ;;  %s825_s19 = int_to_ptr.hbm [resolvable:$true] %s824_s19 }
  0x20   :  { %v179_v2 = vld [vmem:[#allocation5 + $0xf8] sm:$0xff]  ;;  %186 = vmatpush.msra.mxu0 %v178_v0  ;;  %v177_v3 = vld [vmem:[#allocation5 + $0xe8] sm:$0xff]  ;;  %v174_v4 = vld [vmem:[#allocation5 + $0xd0] sm:$0xff]  ;;  %s822_s15 = sshll.u32 %s1066_s14, 4  ;;  %s823_s15 = int_to_ptr.vmem [resolvable:$true] %s822_s15 }
  0x21   :  { %209 = vmatpush.msra.mxu1 %v179_v2  ;;  %v175_v5 = vld [vmem:[#allocation5 + $0xd8] sm:$0xff]  ;;  %v172_v6 = vld [vmem:[#allocation5 + $0xc0] sm:$0xff]  ;;  %v173_v7 = vld [vmem:[#allocation5 + $0xc8] sm:$0xff] }
  0x22   :  { %187 = vmatpush.msra.mxu0 %v176_v1  ;;  %v170_v8 = vld [vmem:[#allocation5 + $0xb0] sm:$0xff]  ;;  %v171_v9 = vld [vmem:[#allocation5 + $0xb8] sm:$0xff]  ;;  %v168_v10 = vld [vmem:[#allocation5 + $0xa0] sm:$0xff] }
  0x23   :  { %210 = vmatpush.msra.mxu1 %v177_v3  ;;  %v169_v11 = vld [vmem:[#allocation5 + $0xa8] sm:$0xff]  ;;  %v166_v12 = vld [vmem:[#allocation5 + $0x90] sm:$0xff]  ;;  %v167_v13 = vld [vmem:[#allocation5 + $0x98] sm:$0xff] }
  0x24   :  { %188 = vmatpush.msra.mxu0 %v174_v4  ;;  %v164_v14 = vld [vmem:[#allocation5 + $0x80] sm:$0xff]  ;;  %v266_v15 = vld [vmem:[#allocation8 + $0xf0] sm:$0xff]  ;;  %v165_v16 = vld [vmem:[#allocation5 + $0x88] sm:$0xff] }
  0x25   :  { %211 = vmatpush.msra.mxu1 %v175_v5  ;;  %306 = vmatpush.msra.mxu2 %v266_v15  ;;  %v264_v17 = vld [vmem:[#allocation8 + $0xe0] sm:$0xff]  ;;  %v298_v18 = vld [vmem:[#allocation8 + $0x1f0] sm:$0xff]  ;;  %v267_v52 = vld [vmem:[#allocation8 + $0xf8] sm:$0xff] }
  0x26   :  { %189 = vmatpush.msra.mxu0 %v172_v6  ;;  %v262_v19 = vld [vmem:[#allocation8 + $0xd0] sm:$0xff]  ;;  %v296_v20 = vld [vmem:[#allocation8 + $0x1e0] sm:$0xff]  ;;  %329 = vmatpush.msra.mxu3 %v298_v18  ;;  %v299_v53 = vld [vmem:[#allocation8 + $0x1f8] sm:$0xff] }
  0x27   :  { %212 = vmatpush.msra.mxu1 %v173_v7  ;;  %v162_v21 = vld [vmem:[#allocation5 + $0x70] sm:$0xff]  ;;  %v163_v22 = vld [vmem:[#allocation5 + $0x78] sm:$0xff]  ;;  %307 = vmatpush.msra.mxu2 %v264_v17  ;;  %v260_v23 = vld [vmem:[#allocation8 + $0xc0] sm:$0xff] }
  0x28   :  { %190 = vmatpush.msra.mxu0 %v170_v8  ;;  %v294_v24 = vld [vmem:[#allocation8 + $0x1d0] sm:$0xff]  ;;  %v160_v25 = vld [vmem:[#allocation5 + $0x60] sm:$0xff]  ;;  %v161_v26 = vld [vmem:[#allocation5 + $0x68] sm:$0xff]  ;;  %330 = vmatpush.msra.mxu3 %v296_v20 }
  0x29   :  { %213 = vmatpush.msra.mxu1 %v171_v9  ;;  %308 = vmatpush.msra.mxu2 %v262_v19  ;;  %v258_v27 = vld [vmem:[#allocation8 + $0xb0] sm:$0xff]  ;;  %v292_v28 = vld [vmem:[#allocation8 + $0x1c0] sm:$0xff]  ;;  %v265_v56 = vld [vmem:[#allocation8 + $0xe8] sm:$0xff] }
  0x2a   :  { %191 = vmatpush.msra.mxu0 %v168_v10  ;;  %v158_v29 = vld [vmem:[#allocation5 + $0x50] sm:$0xff]  ;;  %v159_v30 = vld [vmem:[#allocation5 + $0x58] sm:$0xff]  ;;  %331 = vmatpush.msra.mxu3 %v294_v24  ;;  %v256_v31 = vld [vmem:[#allocation8 + $0xa0] sm:$0xff] }
  0x2b   :  { %214 = vmatpush.msra.mxu1 %v169_v11  ;;  %309 = vmatpush.msra.mxu2 %v260_v23  ;;  %v290_v32 = vld [vmem:[#allocation8 + $0x1b0] sm:$0xff]  ;;  %v156_v33 = vld [vmem:[#allocation5 + $0x40] sm:$0xff]  ;;  %v157_v34 = vld [vmem:[#allocation5 + $0x48] sm:$0xff] }
  0x2c   :  { %192 = vmatpush.msra.mxu0 %v166_v12  ;;  %332 = vmatpush.msra.mxu3 %v292_v28  ;;  %v254_v35 = vld [vmem:[#allocation8 + $0x90] sm:$0xff]  ;;  %v288_v36 = vld [vmem:[#allocation8 + $0x1a0] sm:$0xff]  ;;  %v297_v57 = vld [vmem:[#allocation8 + $0x1e8] sm:$0xff] }
  0x2d   :  { %215 = vmatpush.msra.mxu1 %v167_v13  ;;  %310 = vmatpush.msra.mxu2 %v258_v27  ;;  %v154_v37 = vld [vmem:[#allocation5 + $0x30] sm:$0xff]  ;;  %v155_v38 = vld [vmem:[#allocation5 + $0x38] sm:$0xff]  ;;  %v252_v39 = vld [vmem:[#allocation8 + $0x80] sm:$0xff] }
  0x2e   :  { %193 = vmatpush.msra.mxu0 %v164_v14  ;;  %333 = vmatpush.msra.mxu3 %v290_v32  ;;  %v286_v40 = vld [vmem:[#allocation8 + $0x190] sm:$0xff]  ;;  %v152_v41 = vld [vmem:[#allocation5 + $0x20] sm:$0xff]  ;;  %v153_v42 = vld [vmem:[#allocation5 + $0x28] sm:$0xff] }
  0x2f   :  { %216 = vmatpush.msra.mxu1 %v165_v16  ;;  %311 = vmatpush.msra.mxu2 %v256_v31  ;;  %v250_v43 = vld [vmem:[#allocation8 + $0x70] sm:$0xff]  ;;  %v284_v44 = vld [vmem:[#allocation8 + $0x180] sm:$0xff]  ;;  %v263_v60 = vld [vmem:[#allocation8 + $0xd8] sm:$0xff] }
  0x30   :  { %194 = vmatpush.msra.mxu0 %v162_v21  ;;  %334 = vmatpush.msra.mxu3 %v288_v36  ;;  %v150_v45 = vld [vmem:[#allocation5 + $0x10] sm:$0xff]  ;;  %v151_v46 = vld [vmem:[#allocation5 + $0x18] sm:$0xff]  ;;  %v248_v47 = vld [vmem:[#allocation8 + $0x60] sm:$0xff] }
  0x31   :  { %217 = vmatpush.msra.mxu1 %v163_v22  ;;  %312 = vmatpush.msra.mxu2 %v254_v35  ;;  %v282_v48 = vld [vmem:[#allocation8 + $0x170] sm:$0xff]  ;;  %v148_v49 = vld [vmem:[#allocation5] sm:$0xff]  ;;  %v149_v50 = vld [vmem:[#allocation5 + $0x8] sm:$0xff] }
  0x32   :  { %195 = vmatpush.msra.mxu0 %v160_v25  ;;  %335 = vmatpush.msra.mxu3 %v286_v40  ;;  %v146_v51 = vld [vmem:[#allocation2] sm:$0xff]  ;;  %v280_v55 = vld [vmem:[#allocation8 + $0x160] sm:$0xff]  ;;  %v295_v61 = vld [vmem:[#allocation8 + $0x1d8] sm:$0xff] }
  0x33   :  { %218 = vmatpush.msra.mxu1 %v161_v26  ;;  %313 = vmatpush.msra.mxu2 %v252_v39  ;;  %v246_v54 = vld [vmem:[#allocation8 + $0x50] sm:$0xff]  ;;  %v244_v58 = vld [vmem:[#allocation8 + $0x40] sm:$0xff]  ;;  %v261_v0 = vld [vmem:[#allocation8 + $0xc8] sm:$0xff] }
  0x34   :  { %196 = vmatpush.msra.mxu0 %v158_v29  ;;  %336 = vmatpush.msra.mxu3 %v284_v44  ;;  %v278_v59 = vld [vmem:[#allocation8 + $0x150] sm:$0xff]  ;;  %v276_v63 = vld [vmem:[#allocation8 + $0x140] sm:$0xff]  ;;  %v293_v1 = vld [vmem:[#allocation8 + $0x1c8] sm:$0xff] }
  0x35   :  { %219 = vmatpush.msra.mxu1 %v159_v30  ;;  %314 = vmatpush.msra.mxu2 %v250_v43  ;;  %v242_v62 = vld [vmem:[#allocation8 + $0x30] sm:$0xff]  ;;  %v259_v3 = vld [vmem:[#allocation8 + $0xb8] sm:$0xff]  ;;  %v257_v5 = vld [vmem:[#allocation8 + $0xa8] sm:$0xff] }
  0x36   :  { %197 = vmatpush.msra.mxu0 %v156_v33  ;;  %337 = vmatpush.msra.mxu3 %v282_v48  ;;  %v147_v2 = vld [vmem:[#allocation2 + $0x8] sm:$0xff]  ;;  %v289_v6 = vld [vmem:[#allocation8 + $0x1a8] sm:$0xff]  ;;  %v240_v20 = vld [vmem:[#allocation8 + $0x20] sm:$0xff] }
  0x37   :  { %220 = vmatpush.msra.mxu1 %v157_v34  ;;  %315 = vmatpush.msra.mxu2 %v248_v47  ;;  %v291_v4 = vld [vmem:[#allocation8 + $0x1b8] sm:$0xff]  ;;  %v253_v9 = vld [vmem:[#allocation8 + $0x88] sm:$0xff]  ;;  %v274_v21 = vld [vmem:[#allocation8 + $0x130] sm:$0xff] }
  0x38   :  { %198 = vmatpush.msra.mxu0 %v154_v37  ;;  %338 = vmatpush.msra.mxu3 %v280_v55  ;;  %v255_v7 = vld [vmem:[#allocation8 + $0x98] sm:$0xff]  ;;  %v285_v10 = vld [vmem:[#allocation8 + $0x188] sm:$0xff]  ;;  %v238_v24 = vld [vmem:[#allocation8 + $0x10] sm:$0xff] }
  0x39   :  { %221 = vmatpush.msra.mxu1 %v155_v38  ;;  %316 = vmatpush.msra.mxu2 %v246_v54  ;;  %v287_v8 = vld [vmem:[#allocation8 + $0x198] sm:$0xff]  ;;  %v249_v13 = vld [vmem:[#allocation8 + $0x68] sm:$0xff]  ;;  %v272_v25 = vld [vmem:[#allocation8 + $0x120] sm:$0xff] }
  0x3a   :  { %199 = vmatpush.msra.mxu0 %v152_v41  ;;  %339 = vmatpush.msra.mxu3 %v278_v59  ;;  %v251_v11 = vld [vmem:[#allocation8 + $0x78] sm:$0xff]  ;;  %v281_v14 = vld [vmem:[#allocation8 + $0x168] sm:$0xff]  ;;  %v236_v28 = vld [vmem:[#allocation8] sm:$0xff] }
  0x3b   :  { %222 = vmatpush.msra.mxu1 %v153_v42  ;;  %317 = vmatpush.msra.mxu2 %v244_v58  ;;  %v283_v12 = vld [vmem:[#allocation8 + $0x178] sm:$0xff]  ;;  %v245_v17 = vld [vmem:[#allocation8 + $0x48] sm:$0xff]  ;;  %v270_v29 = vld [vmem:[#allocation8 + $0x110] sm:$0xff] }
  0x3c   :  { %200 = vmatpush.msra.mxu0 %v150_v45  ;;  %340 = vmatpush.msra.mxu3 %v276_v63  ;;  %v247_v15 = vld [vmem:[#allocation8 + $0x58] sm:$0xff]  ;;  %v277_v18 = vld [vmem:[#allocation8 + $0x148] sm:$0xff]  ;;  %v268_v32 = vld [vmem:[#allocation8 + $0x100] sm:$0xff] }
  0x3d   :  { %223 = vmatpush.msra.mxu1 %v151_v46  ;;  %318 = vmatpush.msra.mxu2 %v242_v62  ;;  %v279_v16 = vld [vmem:[#allocation8 + $0x158] sm:$0xff]  ;;  %v241_v22 = vld [vmem:[#allocation8 + $0x28] sm:$0xff]  ;;  %v464_v34 = vld [vmem:[#allocation10 + $0x1f0] sm:$0xff] }
  0x3e   :  { %201 = vmatpush.msra.mxu0 %v148_v49  ;;  %v243_v19 = vld [vmem:[#allocation8 + $0x38] sm:$0xff]  ;;  %341 = vmatpush.msra.mxu3 %v274_v21  ;;  %v273_v27 = vld [vmem:[#allocation8 + $0x128] sm:$0xff]  ;;  %v462_v36 = vld [vmem:[#allocation10 + $0x1e0] sm:$0xff] }
  0x3f   :  { %224 = vmatpush.msra.mxu1 %v149_v50  ;;  %202 = vmatmul.f32.vlgmr.msra.gmra.mxu0 %v146_v51  ;;  %v275_v23 = vld [vmem:[#allocation8 + $0x138] sm:$0xff]  ;;  %v237_v30 = vld [vmem:[#allocation8 + $0x8] sm:$0xff]  ;;  %v460_v38 = vld [vmem:[#allocation10 + $0x1d0] sm:$0xff] }
  0x40   :  { %225 = vmatmul.f32.vlgmr.msra.gmra.mxu1 %v146_v51  ;;  %352 = vmatpush.msrb.mxu0 %v267_v52  ;;  %v239_v26 = vld [vmem:[#allocation8 + $0x18] sm:$0xff]  ;;  %v269_v33 = vld [vmem:[#allocation8 + $0x108] sm:$0xff]  ;;  %v432_v40 = vld [vmem:[#allocation10 + $0xf0] sm:$0xff] }
  0x41   :  { %375 = vmatpush.msrb.mxu1 %v299_v53  ;;  %319 = vmatpush.msra.mxu2 %v240_v20  ;;  %v271_v31 = vld [vmem:[#allocation8 + $0x118] sm:$0xff]  ;;  %v463_v37 = vld [vmem:[#allocation10 + $0x1e8] sm:$0xff]  ;;  %v430_v42 = vld [vmem:[#allocation10 + $0xe0] sm:$0xff] }
  0x42   :  { %353 = vmatpush.msrb.mxu0 %v265_v56  ;;  %342 = vmatpush.msra.mxu3 %v272_v25  ;;  %v465_v35 = vld [vmem:[#allocation10 + $0x1f8] sm:$0xff]  ;;  %v458_v43 = vld [vmem:[#allocation10 + $0x1c0] sm:$0xff]  ;;  %v459_v44 = vld [vmem:[#allocation10 + $0x1c8] sm:$0xff] }
  0x43   :  { %376 = vmatpush.msrb.mxu1 %v297_v57  ;;  %320 = vmatpush.msra.mxu2 %v238_v24  ;;  %v461_v39 = vld [vmem:[#allocation10 + $0x1d8] sm:$0xff]  ;;  %v431_v45 = vld [vmem:[#allocation10 + $0xe8] sm:$0xff]  ;;  %v428_v46 = vld [vmem:[#allocation10 + $0xd0] sm:$0xff] }
  0x44   :  { %354 = vmatpush.msrb.mxu0 %v263_v60  ;;  %343 = vmatpush.msra.mxu3 %v270_v29  ;;  %v433_v41 = vld [vmem:[#allocation10 + $0xf8] sm:$0xff]  ;;  %v456_v48 = vld [vmem:[#allocation10 + $0x1b0] sm:$0xff]  ;;  %v426_v50 = vld [vmem:[#allocation10 + $0xc0] sm:$0xff] }
  0x45   :  { %377 = vmatpush.msrb.mxu1 %v295_v61  ;;  %321 = vmatpush.msra.mxu2 %v236_v28  ;;  %v429_v47 = vld [vmem:[#allocation10 + $0xd8] sm:$0xff]  ;;  %v427_v51 = vld [vmem:[#allocation10 + $0xc8] sm:$0xff]  ;;  %v454_v52 = vld [vmem:[#allocation10 + $0x1a0] sm:$0xff] }
  0x46   :  { %355 = vmatpush.msrb.mxu0 %v261_v0  ;;  %344 = vmatpush.msra.mxu3 %v268_v32  ;;  %v457_v49 = vld [vmem:[#allocation10 + $0x1b8] sm:$0xff]  ;;  %v455_v53 = vld [vmem:[#allocation10 + $0x1a8] sm:$0xff]  ;;  %v424_v54 = vld [vmem:[#allocation10 + $0xb0] sm:$0xff] }
  0x47   :  { %378 = vmatpush.msrb.mxu1 %v293_v1  ;;  %205 = vmatmul.f32.gmra.mxu0 %v147_v2  ;;  %v425_v55 = vld [vmem:[#allocation10 + $0xb8] sm:$0xff]  ;;  %v452_v56 = vld [vmem:[#allocation10 + $0x190] sm:$0xff]  ;;  %v422_v58 = vld [vmem:[#allocation10 + $0xa0] sm:$0xff] }
  0x48   :  { %228 = vmatmul.f32.gmra.mxu1 %v147_v2  ;;  %356 = vmatpush.msrb.mxu0 %v259_v3  ;;  %v453_v57 = vld [vmem:[#allocation10 + $0x198] sm:$0xff]  ;;  %v423_v59 = vld [vmem:[#allocation10 + $0xa8] sm:$0xff]  ;;  %v450_v61 = vld [vmem:[#allocation10 + $0x180] sm:$0xff] }
  0x49   :  { %379 = vmatpush.msrb.mxu1 %v291_v4  ;;  %495 = vmatpush.msrb.mxu3 %v464_v34  ;;  %v180_v60 = vld [vmem:[#allocation7] sm:$0x3]  ;;  %v451_v62 = vld [vmem:[#allocation10 + $0x188] sm:$0xff]  ;;  %v420_v63 = vld [vmem:[#allocation10 + $0x90] sm:$0xff] }
  0x4a   :  { %357 = vmatpush.msrb.mxu0 %v257_v5  ;;  %472 = vmatpush.msrb.mxu2 %v432_v40  ;;  %v421_v0 = vld [vmem:[#allocation10 + $0x98] sm:$0xff]  ;;  %v448_v1 = vld [vmem:[#allocation10 + $0x170] sm:$0xff]  ;;  %v182_v3 = vperm.slane %v180_v60, 0  ;;  %v183_v4 = vperm.slane %v180_v60, 1  ;;  %v418_v5 = vld [vmem:[#allocation10 + $0x80] sm:$0xff] }
  0x4b   :  { %380 = vmatpush.msrb.mxu1 %v289_v6  ;;  %496 = vmatpush.msrb.mxu3 %v462_v36  ;;  %v449_v2 = vld [vmem:[#allocation10 + $0x178] sm:$0xff]  ;;  %v419_v6 = vld [vmem:[#allocation10 + $0x88] sm:$0xff]  ;;  %v440_v28 = vld [vmem:[#allocation10 + $0x130] sm:$0xff] }
  0x4c   :  { %358 = vmatpush.msrb.mxu0 %v255_v7  ;;  %473 = vmatpush.msrb.mxu2 %v430_v42  ;;  %v446_v7 = vld [vmem:[#allocation10 + $0x160] sm:$0xff]  ;;  %v443_v20 = vld [vmem:[#allocation10 + $0x148] sm:$0xff]  ;;  %v436_v36 = vld [vmem:[#allocation10 + $0x110] sm:$0xff] }
  0x4d   :  { %381 = vmatpush.msrb.mxu1 %v287_v8  ;;  %497 = vmatpush.msrb.mxu3 %v460_v38  ;;  %v447_v8 = vld [vmem:[#allocation10 + $0x168] sm:$0xff]  ;;  %v438_v32 = vld [vmem:[#allocation10 + $0x120] sm:$0xff]  ;;  %v437_v38 = vld [vmem:[#allocation10 + $0x118] sm:$0xff] }
  0x4e   :  { %359 = vmatpush.msrb.mxu0 %v253_v9  ;;  %474 = vmatpush.msrb.mxu2 %v428_v46  ;;  %v416_v9 = vld [vmem:[#allocation10 + $0x70] sm:$0xff]  ;;  %v415_v29 = vld [vmem:[#allocation10 + $0x68] sm:$0xff]  ;;  %v434_v40 = vld [vmem:[#allocation10 + $0x100] sm:$0xff] }
  0x4f   :  { %382 = vmatpush.msrb.mxu1 %v285_v10  ;;  %498 = vmatpush.msrb.mxu3 %v458_v43  ;;  %v417_v10 = vld [vmem:[#allocation10 + $0x78] sm:$0xff]  ;;  %v439_v34 = vld [vmem:[#allocation10 + $0x128] sm:$0xff]  ;;  %v406_v43 = vld [vmem:[#allocation10 + $0x20] sm:$0xff] }
  0x50   :  { %360 = vmatpush.msrb.mxu0 %v251_v11  ;;  %475 = vmatpush.msrb.mxu2 %v426_v50  ;;  %v435_v42 = vld [vmem:[#allocation10 + $0x108] sm:$0xff]  ;;  %v405_v46 = vld [vmem:[#allocation10 + $0x18] sm:$0xff] }
  0x51   :  { %383 = vmatpush.msrb.mxu1 %v283_v12  ;;  %499 = vmatpush.msrb.mxu3 %v456_v48  ;;  %v403_v48 = vld [vmem:[#allocation10 + $0x8] sm:$0xff]  ;;  %v631_v50 = vld [vmem:[#allocation11 + $0x1f8] sm:$0xff] }
  0x52   :  { %361 = vmatpush.msrb.mxu0 %v249_v13  ;;  %476 = vmatpush.msrb.mxu2 %v424_v54  ;;  %v444_v13 = vld [vmem:[#allocation10 + $0x150] sm:$0xff]  ;;  %v627_v54 = vld [vmem:[#allocation11 + $0x1d8] sm:$0xff]  ;;  %v597_v60 = vld [vmem:[#allocation11 + $0xe8] sm:$0xff] }
  0x53   :  { %384 = vmatpush.msrb.mxu1 %v281_v14  ;;  %500 = vmatpush.msrb.mxu3 %v454_v52  ;;  %v445_v14 = vld [vmem:[#allocation10 + $0x158] sm:$0xff]  ;;  %v629_v52 = vld [vmem:[#allocation11 + $0x1e8] sm:$0xff] }
  0x54   :  { %362 = vmatpush.msrb.mxu0 %v247_v15  ;;  %477 = vmatpush.msrb.mxu2 %v422_v58  ;;  %v624_v58 = vld [vmem:[#allocation11 + $0x1c0] sm:$0xff] }
  0x55   :  { %385 = vmatpush.msrb.mxu1 %v279_v16  ;;  %501 = vmatpush.msrb.mxu3 %v452_v56  ;;  %v599_v56 = vld [vmem:[#allocation11 + $0xf8] sm:$0xff] }
  0x56   :  { %363 = vmatpush.msrb.mxu0 %v245_v17  ;;  %478 = vmatpush.msrb.mxu2 %v420_v63  ;;  %v595_v63 = vld [vmem:[#allocation11 + $0xd8] sm:$0xff] }
  0x57   :  { %386 = vmatpush.msrb.mxu1 %v277_v18  ;;  %502 = vmatpush.msrb.mxu3 %v450_v61  ;;  %v1169_v61 = vld [vmem:[%s1192_s4] sm:$0x3] }
  0x58   :  { %364 = vmatpush.msrb.mxu0 %v243_v19  ;;  %479 = vmatpush.msrb.mxu2 %v418_v5  ;;  %v442_v19 = vld [vmem:[#allocation10 + $0x140] sm:$0xff] }
  0x59   :  { %387 = vmatpush.msrb.mxu1 %v275_v23  ;;  %503 = vmatpush.msrb.mxu3 %v448_v1  ;;  %v623_v1 = vld [vmem:[#allocation11 + $0x1b8] sm:$0xff]  ;;  %v620_v5 = vld [vmem:[#allocation11 + $0x1a0] sm:$0xff] }
  0x5a   :  { %365 = vmatpush.msrb.mxu0 %v241_v22  ;;  %480 = vmatpush.msrb.mxu2 %v416_v9  ;;  %v618_v9 = vld [vmem:[#allocation11 + $0x190] sm:$0xff] }
  0x5b   :  { %388 = vmatpush.msrb.mxu1 %v273_v27  ;;  %504 = vmatpush.msrb.mxu3 %v446_v7  ;;  %v414_v27 = vld [vmem:[#allocation10 + $0x60] sm:$0xff]  ;;  %v590_v7 = vld [vmem:[#allocation11 + $0xb0] sm:$0xff] }
  0x5c   :  { %366 = vmatpush.msrb.mxu0 %v239_v26  ;;  %481 = vmatpush.msrb.mxu2 %v414_v27 }
  0x5d   :  { %389 = vmatpush.msrb.mxu1 %v271_v31  ;;  %505 = vmatpush.msrb.mxu3 %v444_v13  ;;  %v412_v31 = vld [vmem:[#allocation10 + $0x50] sm:$0xff]  ;;  %v589_v13 = vld [vmem:[#allocation11 + $0xa8] sm:$0xff] }
  0x5e   :  { %367 = vmatpush.msrb.mxu0 %v237_v30  ;;  %v441_v30 = vld [vmem:[#allocation10 + $0x138] sm:$0xff]  ;;  %482 = vmatpush.msrb.mxu2 %v412_v31 }
  0x5f   :  { %390 = vmatpush.msrb.mxu1 %v269_v33  ;;  %506 = vmatpush.msrb.mxu3 %v442_v19  ;;  %v413_v33 = vld [vmem:[#allocation10 + $0x58] sm:$0xff]  ;;  %v302_v19 = vperm.slane %v1169_v61, 0 }
  0x60   :  { %518 = vmatpush.msra.mxu0 %v433_v41  ;;  %v409_v41 = vld [vmem:[#allocation10 + $0x38] sm:$0xff] }
  0x61   :  { %541 = vmatpush.msra.mxu1 %v465_v35  ;;  %507 = vmatpush.msrb.mxu3 %v440_v28  ;;  %v410_v35 = vld [vmem:[#allocation10 + $0x40] sm:$0xff] }
  0x62   :  { %519 = vmatpush.msra.mxu0 %v431_v45  ;;  %483 = vmatpush.msrb.mxu2 %v410_v35  ;;  %v404_v45 = vld [vmem:[#allocation10 + $0x10] sm:$0xff] }
  0x63   :  { %542 = vmatpush.msra.mxu1 %v463_v37  ;;  %508 = vmatpush.msrb.mxu3 %v438_v32  ;;  %v411_v37 = vld [vmem:[#allocation10 + $0x48] sm:$0xff] }
  0x64   :  { %520 = vmatpush.msra.mxu0 %v429_v47  ;;  %v402_v47 = vld [vmem:[#allocation10] sm:$0xff] }
  0x65   :  { %543 = vmatpush.msra.mxu1 %v461_v39  ;;  %509 = vmatpush.msrb.mxu3 %v436_v36  ;;  %v408_v39 = vld [vmem:[#allocation10 + $0x30] sm:$0xff] }
  0x66   :  { %521 = vmatpush.msra.mxu0 %v427_v51  ;;  %484 = vmatpush.msrb.mxu2 %v408_v39  ;;  %v628_v51 = vld [vmem:[#allocation11 + $0x1e0] sm:$0xff] }
  0x67   :  { %544 = vmatpush.msra.mxu1 %v459_v44  ;;  %510 = vmatpush.msrb.mxu3 %v434_v40  ;;  %v407_v44 = vld [vmem:[#allocation10 + $0x28] sm:$0xff]  ;;  %v612_v39 = vld [vmem:[#allocation11 + $0x160] sm:$0xff]  ;;  %v587_v40 = vld [vmem:[#allocation11 + $0x98] sm:$0xff] }
  0x68   :  { %522 = vmatpush.msra.mxu0 %v425_v55  ;;  %485 = vmatpush.msrb.mxu2 %v406_v43  ;;  %v598_v55 = vld [vmem:[#allocation11 + $0xf0] sm:$0xff] }
  0x69   :  { %545 = vmatpush.msra.mxu1 %v457_v49  ;;  %v630_v49 = vld [vmem:[#allocation11 + $0x1f0] sm:$0xff] }
  0x6a   :  { %523 = vmatpush.msra.mxu0 %v423_v59  ;;  %486 = vmatpush.msrb.mxu2 %v404_v45  ;;  %v625_v59 = vld [vmem:[#allocation11 + $0x1c8] sm:$0xff]  ;;  %v610_v43 = vld [vmem:[#allocation11 + $0x150] sm:$0xff]  ;;  %v611_v45 = vld [vmem:[#allocation11 + $0x158] sm:$0xff] }
  0x6b   :  { %546 = vmatpush.msra.mxu1 %v455_v53  ;;  %v626_v53 = vld [vmem:[#allocation11 + $0x1d0] sm:$0xff] }
  0x6c   :  { %524 = vmatpush.msra.mxu0 %v421_v0  ;;  %487 = vmatpush.msrb.mxu2 %v402_v47  ;;  %v622_v0 = vld [vmem:[#allocation11 + $0x1b0] sm:$0xff]  ;;  %v608_v47 = vld [vmem:[#allocation11 + $0x140] sm:$0xff] }
  0x6d   :  { %547 = vmatpush.msra.mxu1 %v453_v57  ;;  %v596_v57 = vld [vmem:[#allocation11 + $0xe0] sm:$0xff] }
  0x6e   :  { %525 = vmatpush.msra.mxu0 %v419_v6  ;;  %v621_v6 = vld [vmem:[#allocation11 + $0x1a8] sm:$0xff] }
  0x6f   :  { %548 = vmatpush.msra.mxu1 %v451_v62  ;;  %v594_v62 = vld [vmem:[#allocation11 + $0xd0] sm:$0xff] }
  0x70   :  { %526 = vmatpush.msra.mxu0 %v417_v10  ;;  %v619_v10 = vld [vmem:[#allocation11 + $0x198] sm:$0xff] }
  0x71   :  { %549 = vmatpush.msra.mxu1 %v449_v2  ;;  %v592_v2 = vld [vmem:[#allocation11 + $0xc0] sm:$0xff] }
  0x72   :  { %527 = vmatpush.msra.mxu0 %v415_v29 }
  0x73   :  { %550 = vmatpush.msra.mxu1 %v447_v8  ;;  %v591_v8 = vld [vmem:[#allocation11 + $0xb8] sm:$0xff] }
  0x74   :  { %528 = vmatpush.msra.mxu0 %v413_v33 }
  0x75   :  { %551 = vmatpush.msra.mxu1 %v445_v14 }
  0x76   :  { %529 = vmatpush.msra.mxu0 %v411_v37 }
  0x77   :  { %552 = vmatpush.msra.mxu1 %v443_v20  ;;  %v614_v20 = vld [vmem:[#allocation11 + $0x170] sm:$0xff] }
  0x78   :  { %530 = vmatpush.msra.mxu0 %v409_v41  ;;  %v613_v41 = vld [vmem:[#allocation11 + $0x168] sm:$0xff] }
  0x79   :  { %553 = vmatpush.msra.mxu1 %v441_v30 }
  0x7a   :  { %531 = vmatpush.msra.mxu0 %v407_v44  ;;  %v585_v44 = vld [vmem:[#allocation11 + $0x88] sm:$0xff] }
  0x7b   :  { %554 = vmatpush.msra.mxu1 %v439_v34 }
  0x7c   :  { %532 = vmatpush.msra.mxu0 %v405_v46  ;;  %v582_v46 = vld [vmem:[#allocation11 + $0x70] sm:$0xff] }
  0x7d   :  { %555 = vmatpush.msra.mxu1 %v437_v38  ;;  %v586_v38 = vld [vmem:[#allocation11 + $0x90] sm:$0xff] }
  0x7e   :  { %533 = vmatpush.msra.mxu0 %v403_v48  ;;  %v583_v48 = vld [vmem:[#allocation11 + $0x78] sm:$0xff] }
  0x7f   :  { %556 = vmatpush.msra.mxu1 %v435_v42  ;;  %v584_v42 = vld [vmem:[#allocation11 + $0x80] sm:$0xff] }
  0xbc   :  { %v203_v11 = vpop.f32.mrf.mxu0 }
  0xbd   :  { %v226_v12 = vpop.f32.mrf.mxu1  ;;  %v204_v15 = vadd.f32 %v203_v11, %v182_v3 }
  0xbe   :  { %v227_v16 = vadd.f32 %v226_v12, %v183_v4  ;;  %v588_v12 = vld [vmem:[#allocation11 + $0xa0] sm:$0xff] }
  0xbf   :  { %v232_v17 = vmax.f32 %v204_v15, 0.0 }
  0xc0   :  { %v233_v18 = vmax.f32 %v227_v16, 0.0  ;;  %v616_v16 = vld [vmem:[#allocation11 + $0x180] sm:$0xff] }
  0xc1   :  { %322 = vmatmul.f32.vlgmr.msra.gmra.mxu2 %v232_v17  ;;  %368 = vmatmul.f32.vlgmr.msrb.gmra.mxu0 %v232_v17  ;;  %v617_v17 = vld [vmem:[#allocation11 + $0x188] sm:$0xff] }
  0xc2   :  { %345 = vmatmul.f32.vlgmr.msra.gmra.mxu3 %v233_v18  ;;  %391 = vmatmul.f32.vlgmr.msrb.gmra.mxu1 %v233_v18 }
  0xc3   :  { %661 = vmatpush.msra.mxu3 %v630_v49  ;;  %707 = vmatpush.msrb.mxu1 %v631_v50  ;;  %v609_v49 = vld [vmem:[#allocation11 + $0x148] sm:$0xff]  ;;  %v580_v50 = vld [vmem:[#allocation11 + $0x60] sm:$0xff] }
  0xc4   :  { %v206_v21 = vpop.f32.mrf.mxu0  ;;  %638 = vmatpush.msra.mxu2 %v598_v55  ;;  %684 = vmatpush.msrb.mxu0 %v599_v56  ;;  %v604_v55 = vld [vmem:[#allocation11 + $0x120] sm:$0xff]  ;;  %v579_v56 = vld [vmem:[#allocation11 + $0x58] sm:$0xff] }
  0xc5   :  { %v229_v22 = vpop.f32.mrf.mxu1  ;;  %v207_v23 = vadd.f32 %v206_v21, %v182_v3  ;;  %662 = vmatpush.msra.mxu3 %v628_v51  ;;  %708 = vmatpush.msrb.mxu1 %v629_v52  ;;  %v593_v3 = vld [vmem:[#allocation11 + $0xc8] sm:$0xff]  ;;  %v615_v21 = vld [vmem:[#allocation11 + $0x178] sm:$0xff]  ;;  %v606_v51 = vld [vmem:[#allocation11 + $0x130] sm:$0xff] }
  0xc6   :  { %v230_v24 = vadd.f32 %v229_v22, %v183_v4  ;;  %639 = vmatpush.msra.mxu2 %v596_v57  ;;  %685 = vmatpush.msrb.mxu0 %v597_v60  ;;  %v303_v4 = vperm.slane %v1169_v61, 1  ;;  %v581_v52 = vld [vmem:[#allocation11 + $0x68] sm:$0xff]  ;;  %v603_v61 = vld [vmem:[#allocation11 + $0x118] sm:$0xff] }
  0xc7   :  { %v234_v25 = vmax.f32 %v207_v23, 0.0  ;;  %663 = vmatpush.msra.mxu3 %v626_v53  ;;  %709 = vmatpush.msrb.mxu1 %v627_v54  ;;  %v607_v53 = vld [vmem:[#allocation11 + $0x138] sm:$0xff]  ;;  %v578_v54 = vld [vmem:[#allocation11 + $0x50] sm:$0xff]  ;;  %v605_v57 = vld [vmem:[#allocation11 + $0x128] sm:$0xff] }
  0xc8   :  { %v235_v26 = vmax.f32 %v230_v24, 0.0  ;;  %640 = vmatpush.msra.mxu2 %v594_v62  ;;  %686 = vmatpush.msrb.mxu0 %v595_v63  ;;  %v577_v60 = vld [vmem:[#allocation11 + $0x48] sm:$0xff]  ;;  %v574_v62 = vld [vmem:[#allocation11 + $0x30] sm:$0xff]  ;;  %v600_v63 = vld [vmem:[#allocation11 + $0x100] sm:$0xff] }
  0xc9   :  { %325 = vmatmul.f32.gmra.mxu2 %v234_v25  ;;  %371 = vmatmul.f32.gmra.mxu0 %v234_v25 }
  0xca   :  { %348 = vmatmul.f32.gmra.mxu3 %v235_v26  ;;  %394 = vmatmul.f32.gmra.mxu1 %v235_v26 }
  0xcb   :  { %664 = vmatpush.msra.mxu3 %v624_v58  ;;  %710 = vmatpush.msrb.mxu1 %v625_v59  ;;  %v576_v58 = vld [vmem:[#allocation11 + $0x40] sm:$0xff]  ;;  %v602_v59 = vld [vmem:[#allocation11 + $0x110] sm:$0xff] }
  0xcc   :  { %641 = vmatpush.msra.mxu2 %v592_v2  ;;  %687 = vmatpush.msrb.mxu0 %v593_v3  ;;  %v572_v2 = vld [vmem:[#allocation11 + $0x20] sm:$0xff]  ;;  %v573_v3 = vld [vmem:[#allocation11 + $0x28] sm:$0xff] }
  0xcd   :  { %665 = vmatpush.msra.mxu3 %v622_v0  ;;  %711 = vmatpush.msrb.mxu1 %v623_v1  ;;  %v575_v0 = vld [vmem:[#allocation11 + $0x38] sm:$0xff]  ;;  %v601_v1 = vld [vmem:[#allocation11 + $0x108] sm:$0xff] }
  0xce   :  { %642 = vmatpush.msra.mxu2 %v590_v7  ;;  %688 = vmatpush.msrb.mxu0 %v591_v8  ;;  %v569_v7 = vld [vmem:[#allocation11 + $0x8] sm:$0xff]  ;;  %v765_v8 = vld [vmem:[#allocation13 + $0xf8] sm:$0xff] }
  0xcf   :  { %666 = vmatpush.msra.mxu3 %v620_v5  ;;  %712 = vmatpush.msrb.mxu1 %v621_v6  ;;  %v571_v5 = vld [vmem:[#allocation11 + $0x18] sm:$0xff]  ;;  %v568_v6 = vld [vmem:[#allocation11] sm:$0xff] }
  0xd0   :  { %643 = vmatpush.msra.mxu2 %v588_v12  ;;  %689 = vmatpush.msrb.mxu0 %v589_v13  ;;  %v763_v12 = vld [vmem:[#allocation13 + $0xe8] sm:$0xff] }
  0xd1   :  { %667 = vmatpush.msra.mxu3 %v618_v9  ;;  %713 = vmatpush.msrb.mxu1 %v619_v10  ;;  %v764_v9 = vld [vmem:[#allocation13 + $0xf0] sm:$0xff]  ;;  %v749_v10 = vld [vmem:[#allocation13 + $0x78] sm:$0xff]  ;;  %v747_v13 = vld [vmem:[#allocation13 + $0x68] sm:$0xff] }
  0xd2   :  { %644 = vmatpush.msra.mxu2 %v586_v38  ;;  %690 = vmatpush.msrb.mxu0 %v587_v40 }
  0xd3   :  { %668 = vmatpush.msra.mxu3 %v616_v16  ;;  %714 = vmatpush.msrb.mxu1 %v617_v17  ;;  %v746_v16 = vld [vmem:[#allocation13 + $0x60] sm:$0xff]  ;;  %v761_v17 = vld [vmem:[#allocation13 + $0xd8] sm:$0xff] }
  0xd4   :  { %645 = vmatpush.msra.mxu2 %v584_v42  ;;  %691 = vmatpush.msrb.mxu0 %v585_v44 }
  0xd5   :  { %669 = vmatpush.msra.mxu3 %v614_v20  ;;  %715 = vmatpush.msrb.mxu1 %v615_v21  ;;  %v760_v20 = vld [vmem:[#allocation13 + $0xd0] sm:$0xff] }
  0xd6   :  { %646 = vmatpush.msra.mxu2 %v582_v46  ;;  %692 = vmatpush.msrb.mxu0 %v583_v48  ;;  %v744_v21 = vld [vmem:[#allocation13 + $0x50] sm:$0xff]  ;;  %v743_v46 = vld [vmem:[#allocation13 + $0x48] sm:$0xff]  ;;  %v742_v48 = vld [vmem:[#allocation13 + $0x40] sm:$0xff] }
  0xd7   :  { %670 = vmatpush.msra.mxu3 %v612_v39  ;;  %716 = vmatpush.msrb.mxu1 %v613_v41 }
  0xd8   :  { %647 = vmatpush.msra.mxu2 %v580_v50  ;;  %693 = vmatpush.msrb.mxu0 %v581_v52  ;;  %v741_v50 = vld [vmem:[#allocation13 + $0x38] sm:$0xff]  ;;  %v740_v52 = vld [vmem:[#allocation13 + $0x30] sm:$0xff] }
  0xd9   :  { %671 = vmatpush.msra.mxu3 %v610_v43  ;;  %717 = vmatpush.msrb.mxu1 %v611_v45 }
  0xda   :  { %648 = vmatpush.msra.mxu2 %v578_v54  ;;  %694 = vmatpush.msrb.mxu0 %v579_v56  ;;  %v739_v54 = vld [vmem:[#allocation13 + $0x28] sm:$0xff]  ;;  %v738_v56 = vld [vmem:[#allocation13 + $0x20] sm:$0xff] }
  0xdb   :  { %672 = vmatpush.msra.mxu3 %v608_v47  ;;  %718 = vmatpush.msrb.mxu1 %v609_v49  ;;  %v756_v47 = vld [vmem:[#allocation13 + $0xb0] sm:$0xff]  ;;  %v755_v49 = vld [vmem:[#allocation13 + $0xa8] sm:$0xff] }
  0xdc   :  { %649 = vmatpush.msra.mxu2 %v576_v58  ;;  %695 = vmatpush.msrb.mxu0 %v577_v60  ;;  %v737_v58 = vld [vmem:[#allocation13 + $0x18] sm:$0xff]  ;;  %v736_v60 = vld [vmem:[#allocation13 + $0x10] sm:$0xff] }
  0xdd   :  { %673 = vmatpush.msra.mxu3 %v606_v51  ;;  %719 = vmatpush.msrb.mxu1 %v607_v53  ;;  %v754_v51 = vld [vmem:[#allocation13 + $0xa0] sm:$0xff]  ;;  %v753_v53 = vld [vmem:[#allocation13 + $0x98] sm:$0xff] }
  0xde   :  { %650 = vmatpush.msra.mxu2 %v574_v62  ;;  %696 = vmatpush.msrb.mxu0 %v575_v0  ;;  %v734_v62 = vld [vmem:[#allocation13] sm:$0xff] }
  0xdf   :  { %674 = vmatpush.msra.mxu3 %v604_v55  ;;  %720 = vmatpush.msrb.mxu1 %v605_v57  ;;  %v752_v55 = vld [vmem:[#allocation13 + $0x90] sm:$0xff]  ;;  %v751_v57 = vld [vmem:[#allocation13 + $0x88] sm:$0xff] }
  0xe0   :  { %651 = vmatpush.msra.mxu2 %v572_v2  ;;  %697 = vmatpush.msrb.mxu0 %v573_v3 }
  0xe1   :  { %675 = vmatpush.msra.mxu3 %v602_v59  ;;  %721 = vmatpush.msrb.mxu1 %v603_v61  ;;  %v750_v59 = vld [vmem:[#allocation13 + $0x80] sm:$0xff]  ;;  %v735_v61 = vld [vmem:[#allocation13 + $0x8] sm:$0xff] }
  0xe2   :  { %698 = vmatpush.msrb.mxu0 %v571_v5 }
  0xe3   :  { %676 = vmatpush.msra.mxu3 %v600_v63  ;;  %722 = vmatpush.msrb.mxu1 %v601_v1  ;;  %v632_v63 = vld [vmem:[%s1196_s8] sm:$0x3] }
  0xe4   :  { %699 = vmatpush.msrb.mxu0 %v569_v7  ;;  %v635_v0 = vperm.slane %v632_v63, 1  ;;  %v634_v5 = vperm.slane %v632_v63, 0 }
 0x13e   :  { %v369_v11 = vpop.f32.mrf.mxu0 }
 0x13f   :  { %v370_v14 = vadd.f32 %v369_v11, %v303_v4  ;;  %v392_v15 = vpop.f32.mrf.mxu1  ;;  %v748_v11 = vld [vmem:[#allocation13 + $0x70] sm:$0xff] }
 0x141   :  { %v393_v18 = vadd.f32 %v392_v15, %v370_v14  ;;  %v762_v14 = vld [vmem:[#allocation13 + $0xe0] sm:$0xff]  ;;  %v466_v15 = vld [vmem:[%s1194_s6] sm:$0x3] }
 0x143   :  { %v399_v22 = vmax.f32 %v393_v18, 0.0  ;;  %v745_v18 = vld [vmem:[#allocation13 + $0x58] sm:$0xff] }
 0x144   :  { %v323_v23 = vpop.f32.mrf.mxu2 }
 0x145   :  { %v324_v24 = vadd.f32 %v323_v23, %v302_v19  ;;  %511 = vmatmul.f32.vlgmr.msrb.gmra.mxu3 %v399_v22  ;;  %557 = vmatmul.f32.vlgmr.msra.gmra.mxu1 %v399_v22  ;;  %v346_v25 = vpop.f32.mrf.mxu3  ;;  %v759_v22 = vld [vmem:[#allocation13 + $0xc8] sm:$0xff] }
 0x146   :  { %v372_v26 = vpop.f32.mrf.mxu0  ;;  %793 = vmatpush.msrb.mxu3 %v765_v8 }
 0x147   :  { %v347_v27 = vadd.f32 %v346_v25, %v324_v24  ;;  %v373_v28 = vadd.f32 %v372_v26, %v303_v4  ;;  %v395_v29 = vpop.f32.mrf.mxu1  ;;  %v570_v4 = vld [vmem:[#allocation11 + $0x10] sm:$0xff]  ;;  %v758_v26 = vld [vmem:[#allocation13 + $0xc0] sm:$0xff] }
 0x148   :  { %652 = vmatpush.msra.mxu2 %v570_v4  ;;  %794 = vmatpush.msrb.mxu3 %v764_v9 }
 0x149   :  { %v398_v30 = vmax.f32 %v347_v27, 0.0  ;;  %v396_v31 = vadd.f32 %v395_v29, %v373_v28  ;;  %v468_v28 = vperm.slane %v466_v15, 0  ;;  %v757_v29 = vld [vmem:[#allocation13 + $0xb8] sm:$0xff] }
 0x14a   :  { %653 = vmatpush.msra.mxu2 %v568_v6  ;;  %795 = vmatpush.msrb.mxu3 %v763_v12 }
 0x14b   :  { %v401_v32 = vmax.f32 %v396_v31, 0.0  ;;  %488 = vmatmul.f32.vlgmr.msrb.gmra.mxu2 %v398_v30  ;;  %534 = vmatmul.f32.vlgmr.msra.gmra.mxu0 %v398_v30 }
 0x14c   :  { %v326_v33 = vpop.f32.mrf.mxu2  ;;  %770 = vmatpush.msrb.mxu2 %v749_v10  ;;  %796 = vmatpush.msrb.mxu3 %v762_v14 }
 0x14d   :  { %v327_v34 = vadd.f32 %v326_v33, %v302_v19  ;;  %514 = vmatmul.f32.gmra.mxu3 %v401_v32  ;;  %560 = vmatmul.f32.gmra.mxu1 %v401_v32  ;;  %v349_v35 = vpop.f32.mrf.mxu3  ;;  %v469_v19 = vperm.slane %v466_v15, 1 }
 0x14e   :  { %771 = vmatpush.msrb.mxu2 %v748_v11  ;;  %797 = vmatpush.msrb.mxu3 %v761_v17 }
 0x14f   :  { %v350_v36 = vadd.f32 %v349_v35, %v327_v34 }
 0x150   :  { %772 = vmatpush.msrb.mxu2 %v747_v13  ;;  %798 = vmatpush.msrb.mxu3 %v760_v20 }
 0x151   :  { %v400_v37 = vmax.f32 %v350_v36, 0.0 }
 0x152   :  { %773 = vmatpush.msrb.mxu2 %v746_v16  ;;  %799 = vmatpush.msrb.mxu3 %v759_v22  ;;  %v852_v22 = vld [vmem:[%s1198_s10] ss:$0 sm:$0xff] }
 0x153   :  { %491 = vmatmul.f32.gmra.mxu2 %v400_v37  ;;  %537 = vmatmul.f32.gmra.mxu0 %v400_v37 }
 0x154   :  { %774 = vmatpush.msrb.mxu2 %v745_v18  ;;  %800 = vmatpush.msrb.mxu3 %v758_v26 }
 0x156   :  { %775 = vmatpush.msrb.mxu2 %v744_v21  ;;  %801 = vmatpush.msrb.mxu3 %v757_v29 }
 0x158   :  { %776 = vmatpush.msrb.mxu2 %v743_v46  ;;  %802 = vmatpush.msrb.mxu3 %v756_v47 }
 0x15a   :  { %777 = vmatpush.msrb.mxu2 %v742_v48  ;;  %803 = vmatpush.msrb.mxu3 %v755_v49 }
 0x15c   :  { %778 = vmatpush.msrb.mxu2 %v741_v50  ;;  %804 = vmatpush.msrb.mxu3 %v754_v51 }
 0x15e   :  { %779 = vmatpush.msrb.mxu2 %v740_v52  ;;  %805 = vmatpush.msrb.mxu3 %v753_v53 }
 0x160   :  { %780 = vmatpush.msrb.mxu2 %v739_v54  ;;  %806 = vmatpush.msrb.mxu3 %v752_v55 }
 0x162   :  { %781 = vmatpush.msrb.mxu2 %v738_v56  ;;  %807 = vmatpush.msrb.mxu3 %v751_v57 }
 0x164   :  { %782 = vmatpush.msrb.mxu2 %v737_v58  ;;  %808 = vmatpush.msrb.mxu3 %v750_v59 }
 0x166   :  { %783 = vmatpush.msrb.mxu2 %v736_v60 }
 0x168   :  { %784 = vmatpush.msrb.mxu2 %v735_v61 }
 0x16a   :  { %785 = vmatpush.msrb.mxu2 %v734_v62 }
 0x1c2   :  { %v558_v23 = vpop.f32.mrf.mxu1 }
 0x1c8   :  { %v535_v24 = vpop.f32.mrf.mxu0  ;;  %v512_v31 = vpop.f32.mrf.mxu3 }
 0x1c9   :  { %v536_v25 = vadd.f32 %v535_v24, %v469_v19 }
 0x1ca   :  { %v561_v37 = vpop.f32.mrf.mxu1 }
 0x1cb   :  { %v559_v27 = vadd.f32 %v558_v23, %v536_v25 }
 0x1cd   :  { %v565_v30 = vmax.f32 %v559_v27, 0.0 }
 0x1ce   :  { %v489_v32 = vpop.f32.mrf.mxu2 }
 0x1cf   :  { %v490_v33 = vadd.f32 %v489_v32, %v468_v28  ;;  %677 = vmatmul.f32.vlgmr.msra.gmra.mxu3 %v565_v30  ;;  %723 = vmatmul.f32.vlgmr.msrb.gmra.mxu1 %v565_v30 }
 0x1d0   :  { %v538_v34 = vpop.f32.mrf.mxu0  ;;  %v515_v43 = vpop.f32.mrf.mxu3 }
 0x1d1   :  { %v513_v35 = vadd.f32 %v512_v31, %v490_v33  ;;  %v539_v36 = vadd.f32 %v538_v34, %v469_v19 }
 0x1d3   :  { %v564_v38 = vmax.f32 %v513_v35, 0.0  ;;  %v562_v39 = vadd.f32 %v561_v37, %v539_v36 }
 0x1d5   :  { %654 = vmatmul.f32.vlgmr.msra.gmra.mxu2 %v564_v38  ;;  %700 = vmatmul.f32.vlgmr.msrb.gmra.mxu0 %v564_v38  ;;  %v567_v40 = vmax.f32 %v562_v39, 0.0 }
 0x1d6   :  { %v492_v41 = vpop.f32.mrf.mxu2 }
 0x1d7   :  { %v493_v42 = vadd.f32 %v492_v41, %v468_v28  ;;  %680 = vmatmul.f32.gmra.mxu3 %v567_v40  ;;  %726 = vmatmul.f32.gmra.mxu1 %v567_v40 }
 0x1d9   :  { %v516_v44 = vadd.f32 %v515_v43, %v493_v42 }
 0x1db   :  { %v566_v45 = vmax.f32 %v516_v44, 0.0 }
 0x1dd   :  { %657 = vmatmul.f32.gmra.mxu2 %v566_v45  ;;  %703 = vmatmul.f32.gmra.mxu0 %v566_v45 }
 0x24c   :  { %v724_v1 = vpop.f32.mrf.mxu1 }
 0x252   :  { %v701_v2 = vpop.f32.mrf.mxu0  ;;  %v678_v7 = vpop.f32.mrf.mxu3 }
 0x253   :  { %v702_v3 = vadd.f32 %v701_v2, %v635_v0 }
 0x254   :  { %v727_v13 = vpop.f32.mrf.mxu1 }
 0x255   :  { %v725_v4 = vadd.f32 %v724_v1, %v702_v3 }
 0x257   :  { %v731_v6 = vmax.f32 %v725_v4, 0.0 }
 0x258   :  { %v655_v8 = vpop.f32.mrf.mxu2 }
 0x259   :  { %v656_v9 = vadd.f32 %v655_v8, %v634_v5  ;;  %809 = vmatmul.f32.vlgmr.msrb.gmra.mxu3 %v731_v6 }
 0x25a   :  { %v704_v10 = vpop.f32.mrf.mxu0  ;;  %v681_v19 = vpop.f32.mrf.mxu3 }
 0x25b   :  { %v679_v11 = vadd.f32 %v678_v7, %v656_v9  ;;  %v705_v12 = vadd.f32 %v704_v10, %v635_v0 }
 0x25d   :  { %v730_v14 = vmax.f32 %v679_v11, 0.0  ;;  %v728_v15 = vadd.f32 %v727_v13, %v705_v12 }
 0x25f   :  { %786 = vmatmul.f32.vlgmr.msrb.gmra.mxu2 %v730_v14  ;;  %v733_v16 = vmax.f32 %v728_v15, 0.0 }
 0x260   :  { %v658_v17 = vpop.f32.mrf.mxu2 }
 0x261   :  { %v659_v18 = vadd.f32 %v658_v17, %v634_v5  ;;  %812 = vmatmul.f32.gmra.mxu3 %v733_v16 }
 0x263   :  { %v682_v20 = vadd.f32 %v681_v19, %v659_v18 }
 0x265   :  { %v732_v21 = vmax.f32 %v682_v20, 0.0 }
 0x267   :  { %789 = vmatmul.f32.gmra.mxu2 %v732_v21 }
 0x2dc   :  { %v810_v23 = vpop.f32.mrf.mxu3 }
 0x2e2   :  { %v787_v24 = vpop.f32.mrf.mxu2 }
 0x2e3   :  { %v788_v25 = vadd.f32 %v852_v22, %v787_v24 }
 0x2e4   :  { %v813_v29 = vpop.f32.mrf.mxu3 }
 0x2e5   :  { %v811_v26 = vadd.f32 %v810_v23, %v788_v25 }
 0x2e7   :  { %816 = vst [vmem:[#allocation14] sm:$0xff] %v811_v26 }
 0x2ea   :  { %v790_v27 = vpop.f32.mrf.mxu2 }
 0x2eb   :  { %v791_v28 = vadd.f32 %v852_v22, %v790_v27 }
 0x2ed   :  { %v814_v30 = vadd.f32 %v813_v29, %v791_v28 }
 0x2ef   :  { %817 = vst [vmem:[#allocation14 + $0x8] sm:$0xff] %v814_v30 }
 0x2f0   :  { %830 = dma.vmem_to_hbm [thread:$0]  %s823_s15, 256, %s825_s19, [#allocation4], %s1061_s17, %s1061_s17, %s1062_s18  }
 0x2f1   :  { %1053 = dma.done.wait [#allocation4], 256  }
 0x2f2   :  { %1054 = vsyncadd [#allocation4], 4294967040 }
 0x2f3   :  { %835 = vsyncpa [#allocation3], 1 }
 0x2f4   :  { %836 = vsyncpa [#allocation6], 1 }
 0x2f5   :  { %837 = vsyncpa [#allocation9], 1 }
 0x2f6   :  { %838 = vsyncpa [#allocation12], 1 }
 0x2f7   :  { %839 = vsyncpa [#allocation4], 1 }

</bundles_post_ra>
